<compile_context>
chip_gen: v7x
topology: tpu7x:2x2x1
jax: 0.10.0
libtpu: 0.0.40
codegen_flags: <defaults>
</compile_context>

<pallas_src>
import jax
import jax.numpy as jnp
from jax.experimental import pallas as pl
from jax.experimental.pallas import tpu as pltpu


def _round_up(x, m):
    return ((x + m - 1) // m) * m


def _cdiv(a, b):
    return -(-a // b)


# ----------------------------------------------------------------------------
# Pallas kernel.
#
# Grid = (M_pad // tm, k_tiles); last axis is the K reduction ("arbitrary").
# Fused weight column groups, each padded to Gpad (= round_up(C, 128)) lanes:
#   g0: i_r + h_r    g1: i_i + h_i    g2: i_n    g3: h_n
# (r/z pre-activation sums happen inside the matmul; i_n / h_n stay separate
#  because the n-gate needs reset_gate * h_n.)
# ----------------------------------------------------------------------------
def gru_cell_kernel(pxh_ref, w_ref, b_ref, h_ref, y_ref, acc_ref):
    k = pl.program_id(1)

    @pl.when(k == 0)
    def _():
        acc_ref[...] = jnp.zeros_like(acc_ref)

    # MXU: bf16 x bf16 -> f32 accumulate.
    acc_ref[...] += jnp.dot(pxh_ref[...], w_ref[...],
                            preferred_element_type=jnp.float32)

    @pl.when(k == pl.num_programs(1) - 1)
    def _():
        gpad = acc_ref.shape[1] // 4
        g = acc_ref[...] + b_ref[...]            # (tm, 4*Gpad) f32

        # 128-lane aligned slices -> free views; gating stays in f32.
        reset_gate = jax.nn.sigmoid(g[:, 0 * gpad:1 * gpad])
        input_gate = jax.nn.sigmoid(g[:, 1 * gpad:2 * gpad])
        newgate = jnp.tanh(g[:, 2 * gpad:3 * gpad]
                           + reset_gate * g[:, 3 * gpad:4 * gpad])
        hidden = h_ref[...]                      # f32 recurrent state
        # Lane-dense (tm, Gpad) store; wrapper slices the valid C channels.
        y_ref[...] = newgate + input_gate * (hidden - newgate)


# ----------------------------------------------------------------------------
# Tiling / VMEM plan (static, computed once per geometry).
# ----------------------------------------------------------------------------
def _tpu_vmem_capacity_bytes():
    try:
        info = pltpu.get_tpu_info()
        cap = getattr(info, "vmem_capacity_bytes", None)
        if cap:
            return int(cap)
    except Exception:
        pass
    return 64 * 1024 * 1024        # conservative default (v7x per-TC)


def make_plan(*, batch, height, width, in_channels, hidden_channels,
              kernel_size, stride, padding, hidden_size, dilation=1,
              block_m=512, matmul_dtype=jnp.bfloat16):
    assert hidden_size % 2 == 1, "conv_hh must be spatially 'same' (odd hidden_size)"
    C = hidden_channels
    OH = (height + 2 * padding - dilation * (kernel_size - 1) - 1) // stride + 1
    OW = (width + 2 * padding - dilation * (kernel_size - 1) - 1) // stride + 1
    M = batch * OH * OW
    Kx = kernel_size * kernel_size * in_channels
    Kh = hidden_size * hidden_size * C
    K = Kx + Kh
    Gpad = _round_up(C, 128)
    N_pad = 4 * Gpad
    K_pad0 = _round_up(K, 128)

    # tm: multiple of 16 (bf16 sublane packing); aim for >= 2 M-tiles so both
    # v7x TensorCores get work (dimension_semantics "parallel" on the M axis).
    tm = max(16, min(block_m, _round_up(M, 16)))
    if M > 16:
        tm = min(tm, _round_up(_cdiv(M, 2), 16))

    vmem_cap = _tpu_vmem_capacity_bytes()
    budget = int(vmem_cap * 0.8)

    def footprint(tm_, tk_):
        act = 2 * tm_ * tk_ * 2          # bf16 activations, double-buffered
        wgt = 2 * tk_ * N_pad * 2        # bf16 fused weight, double-buffered
        bias = 8 * N_pad * 4             # tiny (sublane-padded)
        hid = 2 * tm_ * Gpad * 4         # f32 hidden stream
        out = 2 * tm_ * Gpad * 4         # f32 output tiles
        acc = tm_ * N_pad * 4            # f32 accumulator scratch
        return act + wgt + bias + hid + out + acc

    # Pick (tm, tk) so everything fits the per-core VMEM budget; prefer the
    # weight resident (k_tiles == 1), otherwise K-tile the reduction.
    while True:
        n_k = 1
        while True:
            tk = _round_up(_cdiv(K_pad0, n_k), 128)
            if footprint(tm, tk) <= budget or tk == 128:
                break
            n_k += 1
        if footprint(tm, tk) <= budget or tm <= 16:
            break
        tm = max(16, _round_up(tm // 2, 16))

    M_pad = _round_up(M, tm)
    k_tiles = _cdiv(K_pad0, tk)
    K_pad = k_tiles * tk

    vmem_limit = max(footprint(tm, tk) * 5 // 4 + 2 * 1024 * 1024,
                     16 * 1024 * 1024)
    vmem_limit = min(vmem_limit, vmem_cap)

    return dict(batch=batch, C=C, Cin=in_channels, OH=OH, OW=OW, M=M,
                M_pad=M_pad, Kx=Kx, Kh=Kh, K=K, K_pad=K_pad, tk=tk,
                k_tiles=k_tiles, tm=tm, Gpad=Gpad, N_pad=N_pad,
                kernel_size=kernel_size, stride=stride, padding=padding,
                hidden_size=hidden_size, dilation=dilation,
                vmem_limit_bytes=int(vmem_limit), matmul_dtype=matmul_dtype)


# ----------------------------------------------------------------------------
# Glue: im2col patch extraction (NHWC) and weight packing (done ONCE).
# ----------------------------------------------------------------------------
def _extract_patches(x_nhwc, kh, kw, stride, padding, dilation):
    """im2col: returns (B, OH, OW, kh*kw*C) with (kh, kw, cin) ordering."""
    xp = jnp.pad(x_nhwc, ((0, 0), (padding, padding), (padding, padding), (0, 0)))
    B, Hp, Wp, C = xp.shape
    OH = (Hp - dilation * (kh - 1) - 1) // stride + 1
    OW = (Wp - dilation * (kw - 1) - 1) // stride + 1
    cols = []
    for i in range(kh):
        for j in range(kw):
            sl = xp[:,
                    i * dilation: i * dilation + stride * (OH - 1) + 1: stride,
                    j * dilation: j * dilation + stride * (OW - 1) + 1: stride,
                    :]
            cols.append(sl)
    patches = jnp.stack(cols, axis=3)              # (B, OH, OW, kh*kw, C)
    return patches.reshape(B, OH, OW, kh * kw * C), OH, OW


def _conv_weight_to_matmul(w_oihw):
    """(O, Cin, KH, KW) -> (KH*KW*Cin, O) matching the patch ordering."""
    O, Cin, KH, KW = w_oihw.shape
    return jnp.transpose(w_oihw, (2, 3, 1, 0)).reshape(KH * KW * Cin, O)


def pack_gru_weights(params, plan):
    """Build the fused block-diagonal weight + bias once (reused every step)."""
    C, Kx, K, K_pad = plan["C"], plan["Kx"], plan["K"], plan["K_pad"]
    Gpad, N_pad = plan["Gpad"], plan["N_pad"]
    md = plan["matmul_dtype"]

    wih_m = _conv_weight_to_matmul(params["wih"]).astype(jnp.float32)  # (Kx, 3C)
    whh_m = _conv_weight_to_matmul(params["whh"]).astype(jnp.float32)  # (Kh, 3C)
    bih = params["bih"].astype(jnp.float32)
    bhh = params["bhh"].astype(jnp.float32)

    w = jnp.zeros((K_pad, N_pad), jnp.float32)
    # g0: i_r + h_r  (summed inside the matmul)
    w = w.at[0:Kx, 0 * Gpad:0 * Gpad + C].set(wih_m[:, 0:C])
    w = w.at[Kx:K, 0 * Gpad:0 * Gpad + C].set(whh_m[:, 0:C])
    # g1: i_i + h_i
    w = w.at[0:Kx, 1 * Gpad:1 * Gpad + C].set(wih_m[:, C:2 * C])
    w = w.at[Kx:K, 1 * Gpad:1 * Gpad + C].set(whh_m[:, C:2 * C])
    # g2: i_n,  g3: h_n  (kept separate: n = tanh(i_n + r * h_n))
    w = w.at[0:Kx, 2 * Gpad:2 * Gpad + C].set(wih_m[:, 2 * C:3 * C])
    w = w.at[Kx:K, 3 * Gpad:3 * Gpad + C].set(whh_m[:, 2 * C:3 * C])
    w = w.astype(md)

    b = jnp.zeros((1, N_pad), jnp.float32)
    b = b.at[0, 0 * Gpad:0 * Gpad + C].set(bih[0:C] + bhh[0:C])
    b = b.at[0, 1 * Gpad:1 * Gpad + C].set(bih[C:2 * C] + bhh[C:2 * C])
    b = b.at[0, 2 * Gpad:2 * Gpad + C].set(bih[2 * C:3 * C])
    b = b.at[0, 3 * Gpad:3 * Gpad + C].set(bhh[2 * C:3 * C])
    return {"w": w, "b": b}


# ----------------------------------------------------------------------------
# Forward pass (NCHW in / NCHW out), equivalent to GRU_cell.forward.
# ----------------------------------------------------------------------------
def gru_cell_forward(x_nchw, hidden_nchw, packed, plan):
    C, Cin = plan["C"], plan["Cin"]
    Kx, Kh, K, K_pad = plan["Kx"], plan["Kh"], plan["K"], plan["K_pad"]
    tm, tk, k_tiles = plan["tm"], plan["tk"], plan["k_tiles"]
    Gpad, N_pad = plan["Gpad"], plan["N_pad"]
    M, M_pad = plan["M"], plan["M_pad"]
    md = plan["matmul_dtype"]
    B = x_nchw.shape[0]
    assert B == plan["batch"] and x_nchw.shape[1] == Cin
    assert hidden_nchw.shape[1] == C

    x_nhwc = jnp.transpose(x_nchw, (0, 2, 3, 1))
    h_nhwc = jnp.transpose(hidden_nchw, (0, 2, 3, 1))

    px, OH, OW = _extract_patches(x_nhwc, plan["kernel_size"], plan["kernel_size"],
                                  plan["stride"], plan["padding"], plan["dilation"])
    ph, OHh, OWh = _extract_patches(h_nhwc, plan["hidden_size"], plan["hidden_size"],
                                    1, plan["hidden_size"] // 2, 1)
    assert (OH, OW) == (OHh, OWh) == (plan["OH"], plan["OW"])
    assert B * OH * OW == M

    # Fused activation matrix [px | ph] (bf16), zero-padded to (M_pad, K_pad).
    pxh = jnp.concatenate([px.reshape(M, Kx), ph.reshape(M, Kh)], axis=1).astype(md)
    pxh = jnp.pad(pxh, ((0, M_pad - M), (0, K_pad - K)))

    # Recurrent state as a separate f32, lane-dense (M_pad, Gpad) stream.
    h_flat = jnp.pad(h_nhwc.reshape(M, C).astype(jnp.float32),
                     ((0, M_pad - M), (0, Gpad - C)))

    cost = pl.CostEstimate(
        flops=2 * M_pad * K_pad * N_pad,
        transcendentals=3 * M_pad * Gpad,
        bytes_accessed=(M_pad * K_pad * 2 + K_pad * N_pad * 2 + N_pad * 4
                        + 2 * M_pad * Gpad * 4),
    )

    y_flat = pl.pallas_call(
        gru_cell_kernel,
        out_shape=jax.ShapeDtypeStruct((M_pad, Gpad), jnp.float32),
        grid_spec=pltpu.PrefetchScalarGridSpec(
            num_scalar_prefetch=0,
            grid=(M_pad // tm, k_tiles),
            in_specs=[
                pl.BlockSpec((tm, tk), lambda i, k: (i, k)),       # activations
                pl.BlockSpec((tk, N_pad), lambda i, k: (k, 0)),    # fused weight
                pl.BlockSpec((1, N_pad), lambda i, k: (0, 0)),     # fused bias
                pl.BlockSpec((tm, Gpad), lambda i, k: (i, 0)),     # f32 hidden
            ],
            out_specs=pl.BlockSpec((tm, Gpad), lambda i, k: (i, 0)),
            scratch_shapes=[pltpu.VMEM((tm, N_pad), jnp.float32)],  # accumulator
        ),
        compiler_params=pltpu.CompilerParams(
            dimension_semantics=("parallel", "arbitrary"),
            vmem_limit_bytes=plan["vmem_limit_bytes"],
        ),
        cost_estimate=cost,
    )(pxh, packed["w"], packed["b"], h_flat)

    y_nhwc = y_flat[:M, :C].reshape(B, OH, OW, C)
    return jnp.transpose(y_nhwc, (0, 3, 1, 2))     # back to NCHW


# ----------------------------------------------------------------------------
# Pure-JAX reference (XLA convs) for numerical validation.
# ----------------------------------------------------------------------------
def gru_cell_reference(x, hidden, params, *, kernel_size, stride, padding,
                       hidden_size, dilation=1):
    gate_x = jax.lax.conv_general_dilated(
        x, params["wih"], (stride, stride), [(padding, padding)] * 2,
        rhs_dilation=(dilation, dilation),
        dimension_numbers=("NCHW", "OIHW", "NCHW"),
    ) + params["bih"][None, :, None, None]
    gate_h = jax.lax.conv_general_dilated(
        hidden, params["whh"], (1, 1), [(hidden_size // 2,) * 2] * 2,
        dimension_numbers=("NCHW", "OIHW", "NCHW"),
    ) + params["bhh"][None, :, None, None]
    i_r, i_i, i_n = jnp.split(gate_x, 3, axis=1)
    h_r, h_i, h_n = jnp.split(gate_h, 3, axis=1)
    reset_gate = jax.nn.sigmoid(i_r + h_r)
    input_gate = jax.nn.sigmoid(i_i + h_i)
    newgate = jnp.tanh(i_n + reset_gate * h_n)
    return newgate + input_gate * (hidden - newgate)


# ----------------------------------------------------------------------------
# Deterministic parameter init (mimics nn.Conv2d.reset_parameters bounds)
# ----------------------------------------------------------------------------
def init_params(key, in_channels, hidden_channels, kernel_size, hidden_size):
    gate_channels = 3 * hidden_channels
    k1, k2, k3, k4 = jax.random.split(key, 4)

    fan_ih = in_channels * kernel_size * kernel_size
    bound_ih = 1.0 / jnp.sqrt(fan_ih)
    wih = jax.random.uniform(k1, (gate_channels, in_channels, kernel_size, kernel_size),
                             minval=-bound_ih, maxval=bound_ih, dtype=jnp.float32)
    bih = jax.random.uniform(k2, (gate_channels,),
                             minval=-bound_ih, maxval=bound_ih, dtype=jnp.float32)

    fan_hh = hidden_channels * hidden_size * hidden_size
    bound_hh = 1.0 / jnp.sqrt(fan_hh)
    whh = jax.random.uniform(k3, (gate_channels, hidden_channels, hidden_size, hidden_size),
                             minval=-bound_hh, maxval=bound_hh, dtype=jnp.float32)
    bhh = jax.random.uniform(k4, (gate_channels,),
                             minval=-bound_hh, maxval=bound_hh, dtype=jnp.float32)
    return {"wih": wih, "bih": bih, "whh": whh, "bhh": bhh}


if __name__ == "__main__":
    # GRU_cell(in_channels=4, hidden_channels=8, kernel_size=3, stride=2,
    #          padding=1, hidden_size=3)
    B, Cin, H, W = 2, 4, 16, 16
    hidden_channels = 8
    kernel_size, stride, padding = 3, 2, 1
    hidden_size = 3                      # conv_hh kernel size (odd -> 'same')
    OH, OW = 8, 8                        # conv_ih output spatial (stride 2)

    key = jax.random.PRNGKey(0)
    kx, khid, kp = jax.random.split(key, 3)
    x = jax.random.normal(kx, (B, Cin, H, W), dtype=jnp.float32)
    hidden = jax.random.normal(khid, (B, hidden_channels, OH, OW), dtype=jnp.float32)
    params = init_params(kp, Cin, hidden_channels, kernel_size, hidden_size)

    plan = make_plan(batch=B, height=H, width=W, in_channels=Cin,
                     hidden_channels=hidden_channels, kernel_size=kernel_size,
                     stride=stride, padding=padding, hidden_size=hidden_size)
    packed = pack_gru_weights(params, plan)   # packed ONCE, reused every step

    @jax.jit
    def step(x_, h_, w_, b_):
        return gru_cell_forward(x_, h_, {"w": w_, "b": b_}, plan)

    # Recurrent rollout: hidden is carried in f32 (never bf16 round-tripped).
    h = hidden
    for _ in range(3):
        h = step(x, h, packed["w"], packed["b"])
    h = jax.block_until_ready(h)
    assert h.shape == (B, hidden_channels, OH, OW)

    # Validate against a pure-JAX f32 conv reference (bf16 matmul tolerance).
    h_ref = hidden
    for _ in range(3):
        h_ref = gru_cell_reference(x, h_ref, params, kernel_size=kernel_size,
                                   stride=stride, padding=padding,
                                   hidden_size=hidden_size)
    err = float(jnp.max(jnp.abs(h - h_ref)))
    assert err < 5e-2, f"max abs err too large: {err}"
    print("KERNEL_OK")
</pallas_src>

<mosaic_0001>
module attributes {stable_mosaic.version = 11 : i64} {
  func.func @gru_cell_kernel(%arg0: i32, %arg1: i32, %arg2: memref<64x128xbf16, #tpu.memory_space<vmem>>, %arg3: memref<128x512xbf16, #tpu.memory_space<vmem>>, %arg4: memref<1x512xf32, #tpu.memory_space<vmem>>, %arg5: memref<64x128xf32, #tpu.memory_space<vmem>>, %arg6: memref<64x128xf32, #tpu.memory_space<vmem>>, %arg7: memref<64x512xf32, #tpu.memory_space<vmem>>) attributes {dimension_semantics = [#tpu.dimension_semantics<parallel>, #tpu.dimension_semantics<arbitrary>], iteration_bounds = array<i64: 2, 1>, scalar_prefetch = 0 : i64, scratch_operands = 1 : i64, tpu.core_type = #tpu.core_type<tc>, window_params = [{transform_indices = @transform_0, window_bounds = array<i64: 64, 128>}, {transform_indices = @transform_1, window_bounds = array<i64: 128, 512>}, {pipeline_mode = #tpu.pipeline_mode<synchronous>, transform_indices = @transform_2, window_bounds = array<i64: 1, 512>}, {transform_indices = @transform_3, window_bounds = array<i64: 64, 128>}, {transform_indices = @transform_4, window_bounds = array<i64: 64, 128>}]} {
    %c0_i32 = arith.constant 0 : i32
    %0 = arith.cmpi eq, %arg1, %c0_i32 : i32
    %1 = arith.extui %0 : i1 to i32
    %c0_i32_0 = arith.constant 0 : i32
    %2 = arith.cmpi ne, %1, %c0_i32_0 : i32
    scf.if %2 {
      %cst_10 = arith.constant 0.000000e+00 : f32
      %12 = vector.broadcast %cst_10 : f32 to vector<64x512xf32>
      %c0_11 = arith.constant 0 : index
      %c0_12 = arith.constant 0 : index
      %13 = vector.load %arg7[%c0_11, %c0_12] : memref<64x512xf32, #tpu.memory_space<vmem>>, vector<64x512xf32>
      tpu.vector_store %arg7[%c0_11, %c0_12], %12 {strides = array<i32>} : memref<64x512xf32, #tpu.memory_space<vmem>>, vector<64x512xf32>,
    } else {
    }
    %c0 = arith.constant 0 : index
    %c0_1 = arith.constant 0 : index
    %3 = vector.load %arg7[%c0, %c0_1] : memref<64x512xf32, #tpu.memory_space<vmem>>, vector<64x512xf32>
    %c0_2 = arith.constant 0 : index
    %c0_3 = arith.constant 0 : index
    %4 = vector.load %arg2[%c0_2, %c0_3] : memref<64x128xbf16, #tpu.memory_space<vmem>>, vector<64x128xbf16>
    %c0_4 = arith.constant 0 : index
    %c0_5 = arith.constant 0 : index
    %5 = vector.load %arg3[%c0_4, %c0_5] : memref<128x512xbf16, #tpu.memory_space<vmem>>, vector<128x512xbf16>
    %cst = arith.constant dense<0.000000e+00> : vector<64x512xf32>
    %6 = tpu.matmul %4, %5, %cst {dimension_numbers = #tpu.dot_dimension_numbers<[1], [0], [0], [1], [0, 0, 1, 1], [], []>} : vector<64x128xbf16>, vector<128x512xbf16>, vector<64x512xf32> -> vector<64x512xf32>
    %7 = arith.addf %3, %6 : vector<64x512xf32>
    %c0_6 = arith.constant 0 : index
    %c0_7 = arith.constant 0 : index
    %8 = vector.load %arg7[%c0_6, %c0_7] : memref<64x512xf32, #tpu.memory_space<vmem>>, vector<64x512xf32>
    tpu.vector_store %arg7[%c0_6, %c0_7], %7 {strides = array<i32>} : memref<64x512xf32, #tpu.memory_space<vmem>>, vector<64x512xf32>,
    %c0_i32_8 = arith.constant 0 : i32
    %9 = arith.cmpi eq, %arg1, %c0_i32_8 : i32
    %10 = arith.extui %9 : i1 to i32
    %c0_i32_9 = arith.constant 0 : i32
    %11 = arith.cmpi ne, %10, %c0_i32_9 : i32
    scf.if %11 {
      %c0_10 = arith.constant 0 : index
      %c0_11 = arith.constant 0 : index
      %12 = vector.load %arg7[%c0_10, %c0_11] : memref<64x512xf32, #tpu.memory_space<vmem>>, vector<64x512xf32>
      %c0_12 = arith.constant 0 : index
      %c0_13 = arith.constant 0 : index
      %13 = vector.load %arg4[%c0_12, %c0_13] : memref<1x512xf32, #tpu.memory_space<vmem>>, vector<1x512xf32>
      %14 = vector.broadcast %13 : vector<1x512xf32> to vector<64x512xf32>
      %15 = arith.addf %12, %14 : vector<64x512xf32>
      %16 = vector.extract_strided_slice %15 {offsets = [0, 0], sizes = [64, 128], strides = [1, 1]} : vector<64x512xf32> to vector<64x128xf32>
      %17 = arith.negf %16 : vector<64x128xf32>
      %18 = math.exp %17 : vector<64x128xf32>
      %cst_14 = arith.constant 1.000000e+00 : f32
      %19 = vector.broadcast %cst_14 : f32 to vector<64x128xf32>
      %20 = arith.addf %19, %18 : vector<64x128xf32>
      %21 = arith.divf %19, %20 : vector<64x128xf32>
      %22 = vector.extract_strided_slice %15 {offsets = [0, 128], sizes = [64, 128], strides = [1, 1]} : vector<64x512xf32> to vector<64x128xf32>
      %23 = arith.negf %22 : vector<64x128xf32>
      %24 = math.exp %23 : vector<64x128xf32>
      %cst_15 = arith.constant 1.000000e+00 : f32
      %25 = vector.broadcast %cst_15 : f32 to vector<64x128xf32>
      %26 = arith.addf %25, %24 : vector<64x128xf32>
      %27 = arith.divf %25, %26 : vector<64x128xf32>
      %28 = vector.extract_strided_slice %15 {offsets = [0, 256], sizes = [64, 128], strides = [1, 1]} : vector<64x512xf32> to vector<64x128xf32>
      %29 = vector.extract_strided_slice %15 {offsets = [0, 384], sizes = [64, 128], strides = [1, 1]} : vector<64x512xf32> to vector<64x128xf32>
      %30 = arith.mulf %21, %29 : vector<64x128xf32>
      %31 = arith.addf %28, %30 : vector<64x128xf32>
      %32 = math.tanh %31 : vector<64x128xf32>
      %c0_16 = arith.constant 0 : index
      %c0_17 = arith.constant 0 : index
      %33 = vector.load %arg5[%c0_16, %c0_17] : memref<64x128xf32, #tpu.memory_space<vmem>>, vector<64x128xf32>
      %34 = arith.subf %33, %32 : vector<64x128xf32>
      %35 = arith.mulf %27, %34 : vector<64x128xf32>
      %36 = arith.addf %32, %35 : vector<64x128xf32>
      %c0_18 = arith.constant 0 : index
      %c0_19 = arith.constant 0 : index
      %37 = vector.load %arg6[%c0_18, %c0_19] : memref<64x128xf32, #tpu.memory_space<vmem>>, vector<64x128xf32>
      tpu.vector_store %arg6[%c0_18, %c0_19], %36 {strides = array<i32>} : memref<64x128xf32, #tpu.memory_space<vmem>>, vector<64x128xf32>,
    } else {
    }
    return
  }
  func.func @transform_0(%arg0: i32, %arg1: i32) -> (i32, i32) {
    %c0_i32 = arith.constant 0 : i32
    return %arg0, %arg1 : i32, i32
  }
  func.func @transform_1(%arg0: i32, %arg1: i32) -> (i32, i32) {
    %c0_i32 = arith.constant 0 : i32
    %c0_i32_0 = arith.constant 0 : i32
    return %arg1, %c0_i32 : i32, i32
  }
  func.func @transform_2(%arg0: i32, %arg1: i32) -> (i32, i32) {
    %c0_i32 = arith.constant 0 : i32
    %c0_i32_0 = arith.constant 0 : i32
    %c0_i32_1 = arith.constant 0 : i32
    return %c0_i32, %c0_i32_0 : i32, i32
  }
  func.func @transform_3(%arg0: i32, %arg1: i32) -> (i32, i32) {
    %c0_i32 = arith.constant 0 : i32
    %c0_i32_0 = arith.constant 0 : i32
    return %arg0, %c0_i32 : i32, i32
  }
  func.func @transform_4(%arg0: i32, %arg1: i32) -> (i32, i32) {
    %c0_i32 = arith.constant 0 : i32
    %c0_i32_0 = arith.constant 0 : i32
    return %arg0, %c0_i32 : i32, i32
  }
}

</mosaic_0001>

<bundles_post_ra>
// kernel: step.1
= control target key start
LH: loop header
LB: loop body
LE: loop exit
PB: predicated region body
PF: predicated region fallthrough
CT: control target
= control target key end

     0   :  { %s1391_s15 = smov 0   ;;  %s1393_s16 = smov 0   ;;  %s1665_s0 = inlined_call_operand.vmem [shape: bf16[128,128], index: 0, kind: input, shape index: {}]   ;;  %s1666_s1 = inlined_call_operand.vmem [shape: bf16[128,512], index: 1, kind: input, shape index: {}]   ;;  %s1667_s2 = inlined_call_operand.vmem [shape: f32[1,512], index: 2, kind: input, shape index: {}]   ;;  %s1668_s3 = inlined_call_operand.vmem [shape: f32[128,128], index: 3, kind: input, shape index: {}]   ;;  %s1669_s4 = inlined_call_operand.vmem [shape: f32[128,128], index: 4, kind: output, shape index: {}]  }
   0x1   :  { %s1395_s17 = smov 0  }
   0x2 LB: > { %s26_s18 = sadd.s32 1, %s1359_s16  ;;  %p1123_p0 = scmp.ge.s32.totalorder %s1363_s17, 1  ;;  %s1363_s17 = sphi %s1395_s17, %s14_s17   ;;  %s1359_s16 = sphi %s1393_s16, %s1671_s16   ;;  %s1355_s15 = sphi %s1391_s15, %s1670_s15  }
   0x3   : > { %p28_p1 = scmp.ge.s32.totalorder %s26_s18, 2  ;;  %p203_p2 = scmp.lt.s32.totalorder %s1363_s17, 3 }
   0x5   : > { %s1673_s18 = smov (%p28_p1, %s26_s18), 0  ;;  %p204_p3 = pnand %p1123_p0, %p203_p2 }
   0x6   : > { %v1209_v0 = vld [vmem:[%s1666_s1 + $0x4] ss:$16 sps:$4 sm:$0xff] (!%p204_p3)   ;;  %s1124_s21 = sshll.u32 (!%p204_p3), %s1355_s15, 3  ;;  %v1211_v1 = vld [vmem:[%s1666_s1] ss:$16 sps:$4 sm:$0xff] (!%p204_p3)   ;;  %v1365_v2 = vmov (!%p204_p3), 0   ;;  %v811_v37 = vlaneseq (!%p204_p3) }
   0x7   : > { %207 = sbr.rel (%p204_p3) target bundleno = 329 (0x149), region = 36  ;;  %596 = vmatprep.mubr.bf16.mxu0 (!%p204_p3), %v1365_v2  ;;  %669 = vmatprep.mubr.bf16.mxu1 (!%p204_p3), %v1365_v2  ;;  %v1212_v3 = vld [vmem:[%s1666_s1 + $0x24] ss:$16 sps:$4 sm:$0xff] (!%p204_p3)   ;;  %p244_p4 = scmp.lt.s32.totalorder (!%p204_p3), %s1124_s21, 15  ;;  %v1214_v4 = vld [vmem:[%s1666_s1 + $0x20] ss:$16 sps:$4 sm:$0xff] (!%p204_p3)  }
   0x8   : > { %564 = vmatprep.subr.bf16.mxu0 (!%p204_p3), %v1209_v0  ;;  %v1215_v5 = vld [vmem:[%s1666_s1 + $0x44] ss:$16 sps:$4 sm:$0xff] (!%p204_p3)   ;;  %v1217_v6 = vld [vmem:[%s1666_s1 + $0x40] ss:$16 sps:$4 sm:$0xff] (!%p204_p3)   ;;  %v1227_v8 = vld [vmem:[%s1666_s1 + $0xc] ss:$16 sps:$4 sm:$0xff] (!%p204_p3)  }
   0x9   : > { %565 = vmatpush1.bf16.msra.mxu0 (!%p204_p3), %v1211_v1  ;;  %v1218_v7 = vld [vmem:[%s1666_s1 + $0x64] ss:$16 sps:$4 sm:$0xff] (!%p204_p3)   ;;  %v1229_v9 = vld [vmem:[%s1666_s1 + $0x8] ss:$16 sps:$4 sm:$0xff] (!%p204_p3)   ;;  %v1220_v10 = vld [vmem:[%s1666_s1 + $0x60] ss:$16 sps:$4 sm:$0xff] (!%p204_p3)   ;;  %637 = vmatprep.subr.bf16.mxu1 (!%p204_p3), %v1227_v8 }
   0xa   : > { %566 = vmatprep.subr.bf16.mxu0 (!%p204_p3), %v1212_v3  ;;  %638 = vmatpush1.bf16.msra.mxu1 (!%p204_p3), %v1229_v9  ;;  %v1233_v11 = vld [vmem:[%s1666_s1 + $0x2c] ss:$16 sps:$4 sm:$0xff] (!%p204_p3)   ;;  %v1235_v12 = vld [vmem:[%s1666_s1 + $0x28] ss:$16 sps:$4 sm:$0xff] (!%p204_p3)   ;;  %v1221_v13 = vld [vmem:[%s1666_s1 + $0x84] ss:$16 sps:$4 sm:$0xff] (!%p204_p3)  }
   0xb   : > { %639 = vmatprep.subr.bf16.mxu1 (!%p204_p3), %v1233_v11  ;;  %v1223_v14 = vld [vmem:[%s1666_s1 + $0x80] ss:$16 sps:$4 sm:$0xff] (!%p204_p3)   ;;  %v1239_v15 = vld [vmem:[%s1666_s1 + $0x4c] ss:$16 sps:$4 sm:$0xff] (!%p204_p3)   ;;  %v1241_v16 = vld [vmem:[%s1666_s1 + $0x48] ss:$16 sps:$4 sm:$0xff] (!%p204_p3)  }
   0xc   : > { %v1224_v17 = vld [vmem:[%s1666_s1 + $0xa4] ss:$16 sps:$4 sm:$0xff] (!%p204_p3)   ;;  %v1243_v18 = vld [vmem:[%s1666_s1 + $0x6c] ss:$16 sps:$4 sm:$0xff] (!%p204_p3)   ;;  %v1226_v19 = vld [vmem:[%s1666_s1 + $0xa0] ss:$16 sps:$4 sm:$0xff] (!%p204_p3)  }
   0xd   : > { %567 = vmatpush1.bf16.msra.mxu0 (!%p204_p3), %v1214_v4  ;;  %v1245_v20 = vld [vmem:[%s1666_s1 + $0x68] ss:$16 sps:$4 sm:$0xff] (!%p204_p3)   ;;  %v1230_v21 = vld [vmem:[%s1666_s1 + $0xc4] ss:$16 sps:$4 sm:$0xff] (!%p204_p3)   ;;  %v1246_v22 = vld [vmem:[%s1666_s1 + $0x8c] ss:$16 sps:$4 sm:$0xff] (!%p204_p3)  }
   0xe   : > { %s1675_s21 = smov (!%p244_p4, %s1124_s21), 15  ;;  %568 = vmatprep.subr.bf16.mxu0 %v1215_v5  ;;  %640 = vmatpush1.bf16.msra.mxu1 %v1235_v12  ;;  %v1232_v23 = vld [vmem:[%s1666_s1 + $0xc0] ss:$16 sps:$4 sm:$0xff]   ;;  %v1236_v24 = vld [vmem:[%s1666_s1 + $0xe4] ss:$16 sps:$4 sm:$0xff]   ;;  %v1525_v38 = vshrl.u32 %v811_v37, 7 }
   0xf   : > { %s1125_s14 = sshll.u32 %s1675_s21, 2  ;;  %641 = vmatprep.subr.bf16.mxu1 %v1239_v15  ;;  %v1248_v25 = vld [vmem:[%s1666_s1 + $0x88] ss:$16 sps:$4 sm:$0xff]   ;;  %v1250_v26 = vld [vmem:[%s1666_s1 + $0xac] ss:$16 sps:$4 sm:$0xff]  }
  0x10   : > { %s1456_s27 = scalar_lea.vmem %s1665_s0, %s1125_s14  ;;  %v1238_v27 = vld [vmem:[%s1666_s1 + $0xe0] ss:$16 sps:$4 sm:$0xff]   ;;  %v1252_v28 = vld [vmem:[%s1666_s1 + $0xa8] ss:$16 sps:$4 sm:$0xff]   ;;  %v1253_v29 = vld [vmem:[%s1666_s1 + $0xcc] ss:$16 sps:$4 sm:$0xff]  }
  0x11   : > { %569 = vmatpush1.bf16.msra.mxu0 %v1217_v6  ;;  %v1242_v30 = vld [vmem:[%s1456_s27] sm:$0xff]   ;;  %v1255_v31 = vld [vmem:[%s1666_s1 + $0xc8] ss:$16 sps:$4 sm:$0xff]   ;;  %v1257_v32 = vld [vmem:[%s1666_s1 + $0xec] ss:$16 sps:$4 sm:$0xff]   ;;  %v813_v39 = vsub.s32 0, %v1525_v38 }
  0x12   : > { %570 = vmatprep.subr.bf16.mxu0 %v1218_v7  ;;  %642 = vmatpush1.bf16.msra.mxu1 %v1241_v16  ;;  %v1259_v33 = vld [vmem:[%s1666_s1 + $0xe8] ss:$16 sps:$4 sm:$0xff]   ;;  %v1256_v35 = vld [vmem:[%s1456_s27 + $0x10] sm:$0xff]   ;;  %v1531_v40 = vld [vmem:[%s1667_s2] sm:$0xf]  ;;  %v817_v42 = vsub.s32 1, %v1525_v38 }
  0x13   : > { %643 = vmatprep.subr.bf16.mxu1 %v1243_v18  ;;  %v1249_v34 = vld [vmem:[%s1456_s27 + $0x8] sm:$0xff]   ;;  %v1260_v36 = vld [vmem:[%s1456_s27 + $0x18] sm:$0xff]   ;;  %v1534_v41 = vrot.slane %v1531_v40, %v813_v39  ;;  %v825_v12 = vsub.s32 3, %v1525_v38  ;;  %s1127_s27 = sshll.u32 %s1675_s21, 3 }
  0x14   : > { %v1539_v46 = vrot.slane %v1531_v40, %v817_v42  ;;  %s1613_s28 = scalar_lea.vmem %s1668_s3, %s1127_s27  ;;  %s1629_s5 = scalar_lea.vmem %s1669_s4, %s1127_s27 }
  0x15   : > { %571 = vmatpush1.bf16.msra.mxu0 %v1220_v10 }
  0x16   : > { %572 = vmatprep.subr.bf16.mxu0 %v1221_v13  ;;  %644 = vmatpush1.bf16.msra.mxu1 %v1245_v20 }
  0x17   : > { %645 = vmatprep.subr.bf16.mxu1 %v1246_v22  ;;  %v821_v22 = vsub.s32 2, %v1525_v38 }
  0x19   : > { %573 = vmatpush1.bf16.msra.mxu0 %v1223_v14 }
  0x1a   : > { %574 = vmatprep.subr.bf16.mxu0 %v1224_v17  ;;  %646 = vmatpush1.bf16.msra.mxu1 %v1248_v25  ;;  %v1567_v25 = vrot.slane %v1531_v40, %v825_v12 }
  0x1b   : > { %647 = vmatprep.subr.bf16.mxu1 %v1250_v26 }
  0x1d   : > { %575 = vmatpush1.bf16.msra.mxu0 %v1226_v19 }
  0x1e   : > { %576 = vmatprep.subr.bf16.mxu0 %v1230_v21  ;;  %648 = vmatpush1.bf16.msra.mxu1 %v1252_v28 }
  0x1f   : > { %649 = vmatprep.subr.bf16.mxu1 %v1253_v29  ;;  %v1570_v29 = vrot.slane %v1531_v40, %v821_v22 }
  0x21   : > { %577 = vmatpush1.bf16.msra.mxu0 %v1232_v23 }
  0x22   : > { %578 = vmatprep.subr.bf16.mxu0 %v1236_v24  ;;  %650 = vmatpush1.bf16.msra.mxu1 %v1255_v31 }
  0x23   : > { %651 = vmatprep.subr.bf16.mxu1 %v1257_v32 }
  0x25   : > { %579 = vmatpush1.bf16.msra.mxu0 %v1238_v27 }
  0x26   : > { %652 = vmatpush1.bf16.msra.mxu1 %v1259_v33 }
  0x28   : > { %597 = vmatmul.mubr.bf16.vlgmr.msra.gmra.mrb[0].mxu0 %v1242_v30 }
  0x29   : > { %606 = vmatprep.mubr.bf16.mxu0 %v1365_v2  ;;  %670 = vmatmul.mubr.bf16.vlgmr.msra.gmra.mrb[0].mxu1 %v1242_v30 }
  0x2a   : > { %679 = vmatprep.mubr.bf16.mxu1 %v1365_v2 }
  0x30   : > { %607 = vmatmul.mubr.bf16.gmra.mrb[4].mxu0 %v1249_v34 }
  0x31   : > { %616 = vmatprep.mubr.bf16.mxu0 %v1365_v2  ;;  %680 = vmatmul.mubr.bf16.gmra.mrb[4].mxu1 %v1249_v34 }
  0x32   : > { %689 = vmatprep.mubr.bf16.mxu1 %v1365_v2 }
  0x38   : > { %617 = vmatmul.mubr.bf16.gmra.mrb[8].mxu0 %v1256_v35 }
  0x39   : > { %626 = vmatprep.mubr.bf16.mxu0 %v1365_v2  ;;  %690 = vmatmul.mubr.bf16.gmra.mrb[8].mxu1 %v1256_v35 }
  0x3a   : > { %699 = vmatprep.mubr.bf16.mxu1 %v1365_v2 }
  0x40   : > { %627 = vmatmul.mubr.bf16.gmra.mrb[12].mxu0 %v1260_v36 }
  0x41   : > { %700 = vmatmul.mubr.bf16.gmra.mrb[12].mxu1 %v1260_v36 }
  0xfb   : > { %v598_v43 = vpop.f32.mrb[0].mxu0 }
  0xfc   : > { %v831_v44 = vadd.f32 %v1534_v41, %v598_v43  ;;  %v600_v45 = vpop.f32.mrb[1].mxu0  ;;  %v1543_v54 = vpop.f32.mrb[0].mxu1 }
  0xfd   : > { %v602_v47 = vpop.f32.mrb[2].mxu0  ;;  %v832_v52 = vadd.f32 %v1539_v46, %v600_v45  ;;  %v673_v57 = vpop.f32.mrb[1].mxu1 }
  0xfe   : > { %v1166_v48 = vmul.f32 -1.442695, %v831_v44  ;;  %v835_v49 = vadd.f32 %v1534_v41, %v602_v47  ;;  %v604_v50 = vpop.f32.mrb[3].mxu0  ;;  %v1546_v60 = vpop.f32.mrb[2].mxu1  ;;  %v834_v34 = vadd.f32 %v1567_v25, %v673_v57 }
  0xff   : > { %v1174_v58 = vmul.f32 -1.442695, %v832_v52  ;;  %v1549_v0 = vpop.f32.mrb[3].mxu1  ;;  %v836_v1 = vadd.f32 %v1539_v46, %v604_v50 }
 0x100   : > { %1261 = vpow2.f32 %v1166_v48  ;;  %v1167_v51 = vmul.f32 -1.442695, %v835_v49 }
 0x101   : > { %v1175_v9 = vmul.f32 -1.442695, %v836_v1 }
 0x102   : > { %1263 = vpow2.f32 %v1167_v51  ;;  %v833_v51 = vadd.f32 %v1570_v29, %v1543_v54 }
 0x103   : > { %v608_v53 = vpop.f32.mrb[4].mxu0 }
 0x104   : > { %v839_v55 = vadd.f32 %v1534_v41, %v608_v53  ;;  %v610_v56 = vpop.f32.mrb[5].mxu0  ;;  %v1553_v7 = vpop.f32.mrb[4].mxu1  ;;  %v838_v53 = vadd.f32 %v1567_v25, %v1549_v0 }
 0x105   : > { %v612_v59 = vpop.f32.mrb[6].mxu0  ;;  %v840_v4 = vadd.f32 %v1539_v46, %v610_v56  ;;  %v1557_v13 = vpop.f32.mrb[5].mxu1 }
 0x106   : > { %v1168_v61 = vmul.f32 -1.442695, %v839_v55  ;;  %v843_v62 = vadd.f32 %v1534_v41, %v612_v59  ;;  %v614_v63 = vpop.f32.mrb[7].mxu0  ;;  %v1559_v16 = vpop.f32.mrb[6].mxu1  ;;  %v837_v59 = vadd.f32 %v1570_v29, %v1546_v60 }
 0x107   : > { %v1176_v17 = vmul.f32 -1.442695, %v840_v4  ;;  %v1562_v21 = vpop.f32.mrb[7].mxu1  ;;  %v844_v23 = vadd.f32 %v1539_v46, %v614_v63 }
 0x108   : > { %1265 = vpow2.f32 %v1168_v61  ;;  %v1169_v2 = vmul.f32 -1.442695, %v843_v62 }
 0x109   : > { %1267 = vpow2.f32 %v1174_v58  ;;  %v1177_v33 = vmul.f32 -1.442695, %v844_v23 }
 0x10a   : > { %v1262_v3 = vpop.eup %1261  ;;  %1269 = vpow2.f32 %v1169_v2 }
 0x10b   : > { %v887_v5 = vadd.f32 1.0, %v1262_v3  ;;  %v618_v6 = vpop.f32.mrb[8].mxu0  ;;  %v842_v3 = vadd.f32 %v1567_v25, %v1557_v13 }
 0x10c   : > { %v1264_v8 = vpop.eup %1263  ;;  %v847_v10 = vadd.f32 %v1534_v41, %v618_v6  ;;  %v620_v11 = vpop.f32.mrb[9].mxu0 }
 0x10d   : > { %1271 = vrcp.f32 %v887_v5  ;;  %v888_v14 = vadd.f32 1.0, %v1264_v8  ;;  %v622_v15 = vpop.f32.mrb[10].mxu0  ;;  %v1572_v31 = vpop.f32.mrb[8].mxu1  ;;  %v848_v39 = vadd.f32 %v1539_v46, %v620_v11 }
 0x10e   : > { %v1170_v18 = vmul.f32 -1.442695, %v847_v10  ;;  %v851_v19 = vadd.f32 %v1534_v41, %v622_v15  ;;  %v624_v20 = vpop.f32.mrb[11].mxu0  ;;  %v1576_v37 = vpop.f32.mrb[9].mxu1 }
 0x10f   : > { %1273 = vrcp.f32 %v888_v14  ;;  %v1579_v43 = vpop.f32.mrb[10].mxu1  ;;  %v852_v50 = vadd.f32 %v1539_v46, %v624_v20  ;;  %v1178_v57 = vmul.f32 -1.442695, %v848_v39  ;;  %v841_v14 = vadd.f32 %v1570_v29, %v1553_v7 }
 0x110   : > { %1275 = vpow2.f32 %v1175_v9  ;;  %v1171_v24 = vmul.f32 -1.442695, %v851_v19  ;;  %v1582_v48 = vpop.f32.mrb[11].mxu1  ;;  %v845_v7 = vadd.f32 %v1570_v29, %v1559_v16  ;;  %v849_v39 = vadd.f32 %v1570_v29, %v1572_v31 }
 0x111   : > { %1277 = vpow2.f32 %v1170_v18  ;;  %v1179_v63 = vmul.f32 -1.442695, %v852_v50  ;;  %v853_v31 = vadd.f32 %v1570_v29, %v1579_v43 }
 0x112   : > { %v1266_v26 = vpop.eup %1265  ;;  %1279 = vpow2.f32 %v1176_v17  ;;  %v846_v17 = vadd.f32 %v1567_v25, %v1562_v21 }
 0x113   : > { %v1268_v27 = vpop.eup %1267  ;;  %v889_v28 = vadd.f32 1.0, %v1266_v26  ;;  %1281 = vpow2.f32 %v1171_v24  ;;  %v628_v30 = vpop.f32.mrb[12].mxu0  ;;  %v983_v26 = vld [vmem:[%s1613_s28] sm:$0xff] }
 0x114   : > { %v1270_v32 = vpop.eup %1269  ;;  %v855_v35 = vadd.f32 %v1534_v41, %v628_v30  ;;  %v630_v36 = vpop.f32.mrb[13].mxu0  ;;  %v935_v40 = vadd.f32 1.0, %v1268_v27 }
 0x115   : > { %1283 = vrcp.f32 %v889_v28  ;;  %v890_v38 = vadd.f32 1.0, %v1270_v32  ;;  %v632_v42 = vpop.f32.mrb[14].mxu0  ;;  %v1591_v54 = vpop.f32.mrb[12].mxu1  ;;  %v856_v60 = vadd.f32 %v1539_v46, %v630_v36  ;;  %v850_v32 = vadd.f32 %v1567_v25, %v1576_v37 }
 0x116   : > { %v1172_v44 = vmul.f32 -1.442695, %v855_v35  ;;  %v859_v45 = vadd.f32 %v1534_v41, %v632_v42  ;;  %v634_v47 = vpop.f32.mrb[15].mxu0  ;;  %v1595_v4 = vpop.f32.mrb[13].mxu1  ;;  %v854_v37 = vadd.f32 %v1567_v25, %v1582_v48  ;;  %v985_v48 = vld [vmem:[%s1613_s28 + $0x10] sm:$0xff] }
 0x117   : > { %v1272_v49 = vpop.eup %1271  ;;  %1285 = vrcp.f32 %v890_v38  ;;  %v1598_v8 = vpop.f32.mrb[14].mxu1  ;;  %v860_v13 = vadd.f32 %v1539_v46, %v634_v47  ;;  %v1180_v19 = vmul.f32 -1.442695, %v856_v60 }
 0x118   : > { %1287 = vpow2.f32 %v1177_v33  ;;  %v959_v52 = vmul.f32 %v1272_v49, %v834_v34  ;;  %v1173_v55 = vmul.f32 -1.442695, %v859_v45  ;;  %v1601_v10 = vpop.f32.mrb[15].mxu1  ;;  %v984_v49 = vld [vmem:[%s1613_s28 + $0x8] sm:$0xff] }
 0x119   : > { %v1274_v56 = vpop.eup %1273  ;;  %1289 = vpow2.f32 %v1172_v44  ;;  %v1181_v21 = vmul.f32 -1.442695, %v860_v13 }
 0x11a   : > { %v1276_v41 = vpop.eup %1275  ;;  %1291 = vrcp.f32 %v935_v40  ;;  %v967_v58 = vadd.f32 %v959_v52, %v833_v51  ;;  %v960_v61 = vmul.f32 %v1274_v56, %v838_v53  ;;  %v858_v56 = vadd.f32 %v1567_v25, %v1595_v4 }
 0x11b   : > { %v1278_v62 = vpop.eup %1277  ;;  %1293 = vpow2.f32 %v1173_v55  ;;  %v936_v6 = vadd.f32 1.0, %v1276_v41 }
 0x11c   : > { %v1280_v1 = vpop.eup %1279  ;;  %v891_v2 = vadd.f32 1.0, %v1278_v62  ;;  %1295 = vtanh.f32 %v967_v58  ;;  %v968_v0 = vadd.f32 %v960_v61, %v837_v59 }
 0x11d   : > { %v1282_v5 = vpop.eup %1281  ;;  %1297 = vpow2.f32 %v1178_v57  ;;  %v937_v12 = vadd.f32 1.0, %v1280_v1 }
 0x11e   : > { %1299 = vrcp.f32 %v891_v2  ;;  %v892_v9 = vadd.f32 1.0, %v1282_v5  ;;  %v857_v2 = vadd.f32 %v1570_v29, %v1591_v54  ;;  %v861_v54 = vadd.f32 %v1570_v29, %v1598_v8 }
 0x11f   : > { %v1284_v11 = vpop.eup %1283  ;;  %1301 = vpow2.f32 %v1179_v63 }
 0x120   : > { %1303 = vrcp.f32 %v892_v9  ;;  %v961_v15 = vmul.f32 %v1284_v11, %v842_v3 }
 0x121   : > { %v1286_v18 = vpop.eup %1285  ;;  %1305 = vrcp.f32 %v936_v6  ;;  %v986_v6 = vld [vmem:[%s1613_s28 + $0x18] sm:$0xff] }
 0x122   : > { %v1288_v20 = vpop.eup %1287  ;;  %1307 = vtanh.f32 %v968_v0  ;;  %v969_v46 = vadd.f32 %v961_v15, %v841_v14  ;;  %v962_v22 = vmul.f32 %v1286_v18, %v846_v17  ;;  %v862_v0 = vadd.f32 %v1567_v25, %v1601_v10  ;;  %v987_v18 = vld [vmem:[%s1613_s28 + $0x20] sm:$0xff] }
 0x123   : > { %v1290_v23 = vpop.eup %1289  ;;  %1309 = vrcp.f32 %v937_v12  ;;  %v938_v35 = vadd.f32 1.0, %v1288_v20 }
 0x124   : > { %v1292_v24 = vpop.eup %1291  ;;  %v893_v27 = vadd.f32 1.0, %v1290_v23  ;;  %1311 = vtanh.f32 %v969_v46  ;;  %v970_v28 = vadd.f32 %v962_v22, %v845_v7  ;;  %v988_v7 = vld [vmem:[%s1613_s28 + $0x28] sm:$0xff] }
 0x125   : > { %v1294_v30 = vpop.eup %1293  ;;  %1313 = vpow2.f32 %v1180_v19 }
 0x126   : > { %v1296_v33 = vpop.eup %1295  ;;  %1315 = vrcp.f32 %v893_v27  ;;  %v894_v34 = vadd.f32 1.0, %v1294_v30  ;;  %v989_v30 = vld [vmem:[%s1613_s28 + $0x30] sm:$0xff] }
 0x127   : > { %v1298_v16 = vpop.eup %1297  ;;  %v991_v36 = vsub.f32 %v983_v26, %v1296_v33  ;;  %1317 = vpow2.f32 %v1181_v21 }
 0x128   : > { %v1300_v38 = vpop.eup %1299  ;;  %1319 = vrcp.f32 %v894_v34  ;;  %v939_v47 = vadd.f32 1.0, %v1298_v16  ;;  %v990_v34 = vld [vmem:[%s1613_s28 + $0x38] sm:$0xff] }
 0x129   : > { %v1302_v42 = vpop.eup %1301  ;;  %v999_v40 = vmul.f32 %v1292_v24, %v991_v36  ;;  %1321 = vtanh.f32 %v970_v28  ;;  %v963_v44 = vmul.f32 %v1300_v38, %v850_v32 }
 0x12a   : > { %v1304_v45 = vpop.eup %1303  ;;  %1323 = vrcp.f32 %v938_v35  ;;  %v940_v41 = vadd.f32 1.0, %v1302_v42 }
 0x12b   : > { %v1306_v50 = vpop.eup %1305  ;;  %v1007_v51 = vadd.f32 %v1296_v33, %v999_v40  ;;  %v971_v52 = vadd.f32 %v963_v44, %v849_v39  ;;  %v964_v53 = vmul.f32 %v1304_v45, %v854_v37 }
 0x12c   : > { %v1308_v55 = vpop.eup %1307 }
 0x12d   : > { %v1310_v57 = vpop.eup %1309  ;;  %1015 = vst [vmem:[%s1629_s5] sm:$0xff] %v1007_v51  ;;  %v992_v58 = vsub.f32 %v984_v49, %v1308_v55  ;;  %1325 = vtanh.f32 %v971_v52  ;;  %v972_v59 = vadd.f32 %v964_v53, %v853_v31 }
 0x12e   : > { %v1312_v61 = vpop.eup %1311  ;;  %1327 = vrcp.f32 %v939_v47 }
 0x12f   : > { %v1314_v43 = vpop.eup %1313  ;;  %v1000_v62 = vmul.f32 %v1306_v50, %v992_v58  ;;  %v993_v63 = vsub.f32 %v985_v48, %v1312_v61  ;;  %1329 = vtanh.f32 %v972_v59 }
 0x130   : > { %v1316_v1 = vpop.eup %1315  ;;  %1331 = vrcp.f32 %v940_v41  ;;  %v941_v11 = vadd.f32 1.0, %v1314_v43 }
 0x131   : > { %v1318_v3 = vpop.eup %1317  ;;  %v1008_v4 = vadd.f32 %v1308_v55, %v1000_v62  ;;  %v1001_v5 = vmul.f32 %v1310_v57, %v993_v63  ;;  %v965_v60 = vmul.f32 %v1316_v1, %v858_v56 }
 0x132   : > { %v1320_v9 = vpop.eup %1319  ;;  %v942_v17 = vadd.f32 1.0, %v1318_v3 }
 0x133   : > { %v1322_v12 = vpop.eup %1321  ;;  %1016 = vst [vmem:[%s1629_s5 + $0x8] sm:$0xff] %v1008_v4  ;;  %v1009_v13 = vadd.f32 %v1312_v61, %v1001_v5  ;;  %v973_v14 = vadd.f32 %v965_v60, %v857_v2  ;;  %v966_v15 = vmul.f32 %v1320_v9, %v862_v0 }
 0x134   : > { %v994_v25 = vsub.f32 %v986_v6, %v1322_v12  ;;  %v1324_v10 = vpop.eup %1323 }
 0x135   : > { %1017 = vst [vmem:[%s1629_s5 + $0x10] sm:$0xff] %v1009_v13  ;;  %1333 = vtanh.f32 %v973_v14  ;;  %v974_v19 = vadd.f32 %v966_v15, %v861_v54 }
 0x136   : > { %1335 = vrcp.f32 %v941_v11  ;;  %v1002_v20 = vmul.f32 %v1324_v10, %v994_v25 }
 0x137   : > { %v1326_v46 = vpop.eup %1325  ;;  %1337 = vtanh.f32 %v974_v19 }
 0x138   : > { %v1328_v22 = vpop.eup %1327  ;;  %v1010_v23 = vadd.f32 %v1322_v12, %v1002_v20  ;;  %v995_v29 = vsub.f32 %v987_v18, %v1326_v46  ;;  %1339 = vrcp.f32 %v942_v17 }
 0x139   : > { %v1330_v8 = vpop.eup %1329 }
 0x13a   : > { %1018 = vst [vmem:[%s1629_s5 + $0x18] sm:$0xff] %v1010_v23  ;;  %v1003_v21 = vmul.f32 %v1328_v22, %v995_v29  ;;  %v996_v24 = vsub.f32 %v988_v7, %v1330_v8  ;;  %v1332_v26 = vpop.eup %1331 }
 0x13c   : > { %v1011_v27 = vadd.f32 %v1326_v46, %v1003_v21  ;;  %v1004_v28 = vmul.f32 %v1332_v26, %v996_v24 }
 0x13e   : > { %1019 = vst [vmem:[%s1629_s5 + $0x20] sm:$0xff] %v1011_v27  ;;  %v1012_v32 = vadd.f32 %v1330_v8, %v1004_v28 }
 0x13f   : > { %v1334_v33 = vpop.eup %1333 }
 0x140   : > { %v1336_v16 = vpop.eup %1335  ;;  %1020 = vst [vmem:[%s1629_s5 + $0x28] sm:$0xff] %v1012_v32  ;;  %v997_v35 = vsub.f32 %v989_v30, %v1334_v33 }
 0x141   : > { %v1338_v36 = vpop.eup %1337 }
 0x142   : > { %v1005_v38 = vmul.f32 %v1336_v16, %v997_v35  ;;  %v998_v39 = vsub.f32 %v990_v34, %v1338_v36  ;;  %v1340_v42 = vpop.eup %1339 }
 0x144   : > { %v1013_v40 = vadd.f32 %v1334_v33, %v1005_v38  ;;  %v1006_v44 = vmul.f32 %v1340_v42, %v998_v39 }
 0x146   : > { %1021 = vst [vmem:[%s1629_s5 + $0x30] sm:$0xff] %v1013_v40  ;;  %v1014_v37 = vadd.f32 %v1338_v36, %v1006_v44 }
 0x148   : > { %1022 = vst [vmem:[%s1629_s5 + $0x38] sm:$0xff] %v1014_v37 }
 0x149 PF: > { %s14_s17 = sadd.s32 1, %s1363_s17   ;;  %s1670_s15 = smov %s1359_s16 }
 0x14a   : > { %p11_p5 = scmp.ge.s32.totalorder %s14_s17, 4   ;;  %s1671_s16 = smov %s1673_s18 }
 0x14c   :  { %13 = sbr.rel (!%p11_p5) target bundleno = 2 (0x2), region = 80 }

</bundles_post_ra>
